<compile_context>
chip_gen: v6e
topology: v6e:2x2x1
jax: 0.10.0
libtpu: 0.0.40
codegen_flags: <defaults>
</compile_context>

<pallas_src>
import functools

import jax
import jax.numpy as jnp
from jax.experimental import pallas as pl
from jax.experimental.pallas import tpu as pltpu


def _round_up(x, m):
    return ((x + m - 1) // m) * m


def _fused_mlp_kernel(x_ref, *refs, n_layers):
    """Fused forward pass for one batch tile.

    x_ref:            (K0, TB)   input features x batch-tile (batch on lanes)
    refs[2i], [2i+1]: (Ni, Ki) weight / (Ni, 1) bias for layer i (PyTorch layout)
    refs[-1]:         (N_out, TB) output tile
    """
    o_ref = refs[-1]
    param_refs = refs[:-1]

    h = x_ref[...]  # (K0, TB), float32
    for i in range(n_layers):
        w = param_refs[2 * i][...]       # (Ni, Ki)
        b = param_refs[2 * i + 1][...]   # (Ni, 1)
        y = jnp.dot(w, h, preferred_element_type=jnp.float32) + b  # (Ni, TB)
        if i < n_layers - 1:
            h = jnp.tanh(y)
        else:
            h = jax.nn.sigmoid(y) * 0.9 + 0.1
    o_ref[...] = h.astype(o_ref.dtype)


def fnn_d_forward(x, params, batch_tile=512):
    """FNN_D.forward with a single fused Pallas kernel.

    x:       (B, K0) float32, row-major (PyTorch layout)
    params:  list of (W, b) with W (out, in) and b (out, 1) — PyTorch layout.
    Returns: (B, N_out) float32
    """
    B, K0 = x.shape
    n_layers = len(params)
    assert params[0][0].shape[1] == K0
    n_out = params[-1][0].shape[0]

    # Lane-dense tile: batch goes on the 128-lane axis.  Tile must be a
    # multiple of 128; pad the batch up to a whole number of tiles.
    tile = min(batch_tile, _round_up(B, 128))
    tile = _round_up(tile, 128)
    b_pad = _round_up(B, tile)
    grid = (b_pad // tile,)

    # Present x transposed (features, B_pad); padding columns are zeros and
    # are sliced away after the kernel (layout plumbing, not compute).
    x_t = jnp.transpose(x)
    if b_pad != B:
        x_t = jnp.pad(x_t, ((0, 0), (0, b_pad - B)))

    kernel = functools.partial(_fused_mlp_kernel, n_layers=n_layers)

    in_specs = [pl.BlockSpec((K0, tile), lambda i: (0, i))]  # x tile (pipelined)
    flat_params = []
    for w, b in params:
        # Full-array, constant-index specs: DMA'd once, resident across tiles.
        in_specs.append(pl.BlockSpec(w.shape, lambda i: (0, 0)))
        in_specs.append(pl.BlockSpec(b.shape, lambda i: (0, 0)))
        flat_params.extend([w, b])

    out_specs = pl.BlockSpec((n_out, tile), lambda i: (0, i))

    # Advisory cost estimate: the kernel is HBM/launch-bound, not FLOP-bound.
    flops = 2 * b_pad * sum(w.shape[0] * w.shape[1] for w, _ in params)
    transcendentals = b_pad * sum(w.shape[0] for w, _ in params)
    bytes_accessed = 4 * b_pad * (K0 + n_out) + sum(
        4 * (w.size + b.size) for w, b in params
    )

    y_t = pl.pallas_call(
        kernel,
        out_shape=jax.ShapeDtypeStruct((n_out, b_pad), x.dtype),
        grid_spec=pltpu.PrefetchScalarGridSpec(
            num_scalar_prefetch=0,
            grid=grid,
            in_specs=in_specs,
            out_specs=out_specs,
        ),
        compiler_params=pltpu.CompilerParams(
            dimension_semantics=("parallel",),
        ),
        cost_estimate=pl.CostEstimate(
            flops=flops,
            transcendentals=transcendentals,
            bytes_accessed=bytes_accessed,
        ),
    )(x_t, *flat_params)

    return jnp.transpose(y_t[:, :B])  # back to (B, N_out)


def init_fnn_d_params(key, layer_sizes):
    """Xavier-uniform weights (like nn.init.xavier_uniform_) and
    PyTorch-default-style uniform biases, stored in PyTorch (out, in) layout."""
    params = []
    for i in range(1, len(layer_sizes)):
        fan_in, fan_out = layer_sizes[i - 1], layer_sizes[i]
        key, wk, bk = jax.random.split(key, 3)
        limit = jnp.sqrt(6.0 / (fan_in + fan_out))
        w = jax.random.uniform(wk, (fan_out, fan_in), jnp.float32, -limit, limit)
        b_bound = 1.0 / jnp.sqrt(fan_in)
        b = jax.random.uniform(bk, (fan_out, 1), jnp.float32, -b_bound, b_bound)
        params.append((w, b))
    return params


def fnn_d_reference(x, params):
    """Pure-JAX reference for correctness checking (PyTorch-layout params)."""
    n_layers = len(params)
    for i in range(n_layers - 1):
        w, b = params[i]
        x = jnp.tanh(x @ w.T + b[:, 0])
    w, b = params[-1]
    x = jax.nn.sigmoid(x @ w.T + b[:, 0]) * 0.9 + 0.1
    return x


if __name__ == "__main__":
    # Small PINN-style network: 8 input coords -> 32 -> 32 -> 1 output.
    layer_sizes = [8, 32, 32, 1]
    batch = 200  # ragged on purpose: exercises padding + a 2-step grid

    key = jax.random.PRNGKey(0)
    key, xk, pk = jax.random.split(key, 3)
    x = jax.random.normal(xk, (batch, layer_sizes[0]), jnp.float32)
    params = init_fnn_d_params(pk, layer_sizes)

    out = fnn_d_forward(x, params, batch_tile=128)
    out = jax.block_until_ready(out)

    ref = fnn_d_reference(x, params)
    assert out.shape == (batch, layer_sizes[-1])
    assert jnp.allclose(out, ref, atol=1e-5, rtol=1e-5), "mismatch vs. reference"

    print("KERNEL_OK")
</pallas_src>

<mosaic_0001>
module attributes {stable_mosaic.version = 11 : i64} {
  func.func @_fused_mlp_kernel(%arg0: i32, %arg1: memref<8x128xf32, #tpu.memory_space<vmem>>, %arg2: memref<32x8xf32, #tpu.memory_space<vmem>>, %arg3: memref<32x1xf32, #tpu.memory_space<vmem>>, %arg4: memref<32x32xf32, #tpu.memory_space<vmem>>, %arg5: memref<32x1xf32, #tpu.memory_space<vmem>>, %arg6: memref<1x32xf32, #tpu.memory_space<vmem>>, %arg7: memref<1x1xf32, #tpu.memory_space<vmem>>, %arg8: memref<1x128xf32, #tpu.memory_space<vmem>>) attributes {dimension_semantics = [#tpu.dimension_semantics<parallel>], iteration_bounds = array<i64: 2>, scalar_prefetch = 0 : i64, scratch_operands = 0 : i64, tpu.core_type = #tpu.core_type<tc>, window_params = [{transform_indices = @transform_0, window_bounds = array<i64: 8, 128>}, {pipeline_mode = #tpu.pipeline_mode<synchronous>, transform_indices = @transform_1, window_bounds = array<i64: 32, 8>}, {pipeline_mode = #tpu.pipeline_mode<synchronous>, transform_indices = @transform_2, window_bounds = array<i64: 32, 1>}, {pipeline_mode = #tpu.pipeline_mode<synchronous>, transform_indices = @transform_3, window_bounds = array<i64: 32, 32>}, {pipeline_mode = #tpu.pipeline_mode<synchronous>, transform_indices = @transform_4, window_bounds = array<i64: 32, 1>}, {pipeline_mode = #tpu.pipeline_mode<synchronous>, transform_indices = @transform_5, window_bounds = array<i64: 1, 32>}, {pipeline_mode = #tpu.pipeline_mode<synchronous>, transform_indices = @transform_6, window_bounds = array<i64: 1, 1>}, {transform_indices = @transform_7, window_bounds = array<i64: 1, 128>}]} {
    %c0 = arith.constant 0 : index
    %c0_0 = arith.constant 0 : index
    %0 = vector.load %arg1[%c0, %c0_0] : memref<8x128xf32, #tpu.memory_space<vmem>>, vector<8x128xf32>
    %c0_1 = arith.constant 0 : index
    %c0_2 = arith.constant 0 : index
    %1 = vector.load %arg2[%c0_1, %c0_2] : memref<32x8xf32, #tpu.memory_space<vmem>>, vector<32x8xf32>
    %c0_3 = arith.constant 0 : index
    %c0_4 = arith.constant 0 : index
    %2 = vector.load %arg3[%c0_3, %c0_4] : memref<32x1xf32, #tpu.memory_space<vmem>>, vector<32x1xf32>
    %cst = arith.constant dense<0.000000e+00> : vector<32x128xf32>
    %3 = tpu.matmul %1, %0, %cst {dimension_numbers = #tpu.dot_dimension_numbers<[1], [0], [0], [1], [0, 0, 1, 1], [], []>} : vector<32x8xf32>, vector<8x128xf32>, vector<32x128xf32> -> vector<32x128xf32>
    %4 = vector.broadcast %2 : vector<32x1xf32> to vector<32x128xf32>
    %5 = arith.addf %3, %4 : vector<32x128xf32>
    %6 = math.tanh %5 : vector<32x128xf32>
    %c0_5 = arith.constant 0 : index
    %c0_6 = arith.constant 0 : index
    %7 = vector.load %arg4[%c0_5, %c0_6] : memref<32x32xf32, #tpu.memory_space<vmem>>, vector<32x32xf32>
    %c0_7 = arith.constant 0 : index
    %c0_8 = arith.constant 0 : index
    %8 = vector.load %arg5[%c0_7, %c0_8] : memref<32x1xf32, #tpu.memory_space<vmem>>, vector<32x1xf32>
    %cst_9 = arith.constant dense<0.000000e+00> : vector<32x128xf32>
    %9 = tpu.matmul %7, %6, %cst_9 {dimension_numbers = #tpu.dot_dimension_numbers<[1], [0], [0], [1], [0, 0, 1, 1], [], []>} : vector<32x32xf32>, vector<32x128xf32>, vector<32x128xf32> -> vector<32x128xf32>
    %10 = vector.broadcast %8 : vector<32x1xf32> to vector<32x128xf32>
    %11 = arith.addf %9, %10 : vector<32x128xf32>
    %12 = math.tanh %11 : vector<32x128xf32>
    %c0_10 = arith.constant 0 : index
    %c0_11 = arith.constant 0 : index
    %13 = vector.load %arg6[%c0_10, %c0_11] : memref<1x32xf32, #tpu.memory_space<vmem>>, vector<1x32xf32>
    %c0_12 = arith.constant 0 : index
    %c0_13 = arith.constant 0 : index
    %14 = vector.load %arg7[%c0_12, %c0_13] : memref<1x1xf32, #tpu.memory_space<vmem>>, vector<1x1xf32>
    %cst_14 = arith.constant dense<0.000000e+00> : vector<1x128xf32>
    %15 = tpu.matmul %13, %12, %cst_14 {dimension_numbers = #tpu.dot_dimension_numbers<[1], [0], [0], [1], [0, 0, 1, 1], [], []>} : vector<1x32xf32>, vector<32x128xf32>, vector<1x128xf32> -> vector<1x128xf32>
    %16 = vector.broadcast %14 : vector<1x1xf32> to vector<1x128xf32>
    %17 = arith.addf %15, %16 : vector<1x128xf32>
    %18 = arith.negf %17 : vector<1x128xf32>
    %19 = math.exp %18 : vector<1x128xf32>
    %cst_15 = arith.constant 1.000000e+00 : f32
    %20 = vector.broadcast %cst_15 : f32 to vector<1x128xf32>
    %21 = arith.addf %20, %19 : vector<1x128xf32>
    %22 = arith.divf %20, %21 : vector<1x128xf32>
    %cst_16 = arith.constant 0.899999976 : f32
    %23 = vector.broadcast %cst_16 : f32 to vector<1x128xf32>
    %24 = arith.mulf %22, %23 : vector<1x128xf32>
    %cst_17 = arith.constant 1.000000e-01 : f32
    %25 = vector.broadcast %cst_17 : f32 to vector<1x128xf32>
    %26 = arith.addf %24, %25 : vector<1x128xf32>
    %c0_18 = arith.constant 0 : index
    %c0_19 = arith.constant 0 : index
    %27 = vector.load %arg8[%c0_18, %c0_19] : memref<1x128xf32, #tpu.memory_space<vmem>>, vector<1x128xf32>
    tpu.vector_store %arg8[%c0_18, %c0_19], %26 {strides = array<i32>} : memref<1x128xf32, #tpu.memory_space<vmem>>, vector<1x128xf32>,
    return
  }
  func.func @transform_0(%arg0: i32) -> (i32, i32) {
    %c0_i32 = arith.constant 0 : i32
    %c0_i32_0 = arith.constant 0 : i32
    return %c0_i32, %arg0 : i32, i32
  }
  func.func @transform_1(%arg0: i32) -> (i32, i32) {
    %c0_i32 = arith.constant 0 : i32
    %c0_i32_0 = arith.constant 0 : i32
    %c0_i32_1 = arith.constant 0 : i32
    return %c0_i32, %c0_i32_0 : i32, i32
  }
  func.func @transform_2(%arg0: i32) -> (i32, i32) {
    %c0_i32 = arith.constant 0 : i32
    %c0_i32_0 = arith.constant 0 : i32
    %c0_i32_1 = arith.constant 0 : i32
    return %c0_i32, %c0_i32_0 : i32, i32
  }
  func.func @transform_3(%arg0: i32) -> (i32, i32) {
    %c0_i32 = arith.constant 0 : i32
    %c0_i32_0 = arith.constant 0 : i32
    %c0_i32_1 = arith.constant 0 : i32
    return %c0_i32, %c0_i32_0 : i32, i32
  }
  func.func @transform_4(%arg0: i32) -> (i32, i32) {
    %c0_i32 = arith.constant 0 : i32
    %c0_i32_0 = arith.constant 0 : i32
    %c0_i32_1 = arith.constant 0 : i32
    return %c0_i32, %c0_i32_0 : i32, i32
  }
  func.func @transform_5(%arg0: i32) -> (i32, i32) {
    %c0_i32 = arith.constant 0 : i32
    %c0_i32_0 = arith.constant 0 : i32
    %c0_i32_1 = arith.constant 0 : i32
    return %c0_i32, %c0_i32_0 : i32, i32
  }
  func.func @transform_6(%arg0: i32) -> (i32, i32) {
    %c0_i32 = arith.constant 0 : i32
    %c0_i32_0 = arith.constant 0 : i32
    %c0_i32_1 = arith.constant 0 : i32
    return %c0_i32, %c0_i32_0 : i32, i32
  }
  func.func @transform_7(%arg0: i32) -> (i32, i32) {
    %c0_i32 = arith.constant 0 : i32
    %c0_i32_0 = arith.constant 0 : i32
    return %c0_i32, %arg0 : i32, i32
  }
}

</mosaic_0001>

<bundles_post_ra>
// kernel: tpu_custom_call.1
= control target key start
LH: loop header
LB: loop body
LE: loop exit
PB: predicated region body
PF: predicated region fallthrough
CT: control target
= control target key end

     0   :  { %s1086_s0 = inlined_call_operand.vmem [shape: f32[8,256], index: 0, kind: input, shape index: {}]   ;;  %s1087_s1 = inlined_call_operand.vmem [shape: f32[32,8], index: 1, kind: input, shape index: {}]   ;;  %s1088_s2 = inlined_call_operand.vmem [shape: f32[32,1], index: 2, kind: input, shape index: {}]   ;;  %s1089_s3 = inlined_call_operand.vmem [shape: f32[32,32], index: 3, kind: input, shape index: {}]   ;;  %s1090_s4 = inlined_call_operand.vmem [shape: f32[32,1], index: 4, kind: input, shape index: {}]   ;;  %s1091_s5 = inlined_call_operand.vmem [shape: f32[1,32], index: 5, kind: input, shape index: {}]   ;;  %s1092_s6 = inlined_call_operand.<no memory space> [shape: f32[1,1], index: 6, kind: input, shape index: {}]   ;;  %s1093_s7 = inlined_call_operand.hbm [shape: f32[1,256], index: 7, kind: output, shape index: {}]  }
   0x1   :  { %v12_v0 = vstv %s1092_s6 }
   0x2   :  { %13 = vst [vmem:[#allocation2] sm:$0x1] %v12_v0 }
   0x3   :  { %14 = vsyncpa [#allocation4], 0 }
   0x4   :  { %16 = vsyncpa [#allocation4 + $0x1], 0  ;;  %s939_s26 = smov 0   ;;  %s941_s27 = smov 0  }
   0x5   :  { %s943_s28 = smov 0   ;;  %s945_s29 = smov 0  }
   0x6 LB: > { %s960_s6 = sadd.s32 4294967295, %s890_s29   ;;  %s697_s30 = sadd.s32 4294967294, %s890_s29   ;;  %s890_s29 = sphi %s945_s29, %s1099_s29   ;;  %s886_s28 = sphi %s943_s28, %s1098_s28   ;;  %s882_s27 = sphi %s941_s27, %s1097_s27   ;;  %s878_s26 = sphi %s939_s26, %s1096_s26  }
   0x7   : > { %s964_s8 = sadd.s32 1, %s890_s29   ;;  %s181_s9 = sadd.s32 1, %s886_s28 }
   0x8   : > { %s178_s10 = ssub.s32 %s890_s29, %s964_s8  ;;  %p191_p0 = scmp.ne.s32.totalorder %s886_s28, %s882_s27 }
   0x9   : > { %p179_p1 = scmp.eq.s32.totalorder %s178_s10, 0  ;;  %p192_p2 = scmp.eq.s32.totalorder %s960_s6, 1 }
   0xa   : > { %p197_p3 = scmp.ne.s32.totalorder %s882_s27, %s878_s26  ;;  %p198_p4 = scmp.eq.s32.totalorder %s697_s30, 1 }
   0xb   : > { %s975_s11 = scalar_select %p179_p1, %s886_s28, %s181_s9  }
   0xc   : > { %p977_p5 = por %p192_p2, %p191_p0  ;;  %p981_p6 = por %p198_p4, %p197_p3 }
   0xd   : > { %p700_p7 = scmp.ge.s32.totalorder %s890_s29, 1  ;;  %p241_p8 = scmp.lt.s32.totalorder %s890_s29, 3 }
   0xf   : > { %p242_p9 = pnand %p700_p7, %p241_p8 }
  0x10   : > { %p271_p10 = scmp.lt.s32.totalorder (!%p242_p9), %s960_s6, 1  ;;  %s712_s24 = sshll.u32 (!%p242_p9), %s960_s6, 4 }
  0x11   : > { %245 = sbr.rel (%p242_p9) target bundleno = 714 (0x2ca), region = 48  ;;  %s640_s14 = scalar_lea.hbm (!%p242_p9), %s1093_s7, %s712_s24 }
  0x12   : > { %s895_s17 = smov (!%p242_p9), [#allocation3]  }
  0x16   : > { %v276_v1 = vld [vmem:[%s1087_s1] sm:$0xff]  ;;  %vm304_vm0 = vcmask 64512   ;;  %v892_v2 = vmov 0   ;;  %v283_v3 = vld [vmem:[%s1088_s2 + $0x18] sm:$0xff]  ;;  %s272_s18 = scalar_select %p271_p10, %s960_s6, 1  ;;  %v281_v4 = vld [vmem:[%s1088_s2 + $0x8] sm:$0xff]  ;;  %v543_v54 = vlaneseq }
  0x17   : > { %735 = vmatprep.mubr.msk.f32.mxu0 %vm304_vm0, %v276_v1  ;;  %808 = vset.pattern.permute.xlu0 %v892_v2  ;;  %v282_v5 = vld [vmem:[%s1088_s2 + $0x10] sm:$0xff]  ;;  %v280_v6 = vld [vmem:[%s1088_s2] sm:$0xff]  ;;  %v277_v8 = vld [vmem:[%s1087_s1 + $0x8] sm:$0xff]  ;;  %vm434_vm1 = vcmask 261120   ;;  %v893_v36 = vmov 0.0   ;;  %vm894_vm2 = vmmov 0  }
  0x18   : > { %301 = vperm.xlu0 %808, %v283_v3   ;;  %809 = vset.pattern.permute.xlu1 %v892_v2  ;;  %s701_s23 = sshll.u32 %s272_s18, 3  ;;  %v278_v9 = vld [vmem:[%s1087_s1 + $0x10] sm:$0xff]  ;;  %v413_v10 = vld [vmem:[%s1090_s4 + $0x18] sm:$0xff]  ;;  %v411_v13 = vld [vmem:[%s1090_s4 + $0x8] sm:$0xff]  ;;  %v544_v55 = vshrl.u32 %v543_v54, 7  ;;  %s834_s18 = sshll.u32 %s895_s17, 4  ;;  %s835_s18 = int_to_ptr.vmem [resolvable:$false] %s834_s18 }
  0x19   : > { %291 = vperm.xlu1 %809, %v281_v4   ;;  %s274_s10 = scalar_lea.vmem %s1086_s0, %s701_s23  ;;  %v412_v11 = vld [vmem:[%s1090_s4 + $0x10] sm:$0xff]  ;;  %v279_v12 = vld [vmem:[%s1087_s1 + $0x18] sm:$0xff]  ;;  %v410_v14 = vld [vmem:[%s1090_s4] sm:$0xff]  ;;  %s269_s23 = sand.u32 1, %s882_s27  }
  0x1a   : > { %v275_v7 = vld [vmem:[%s274_s10] sm:$0xff]  ;;  %v407_v33 = vld [vmem:[%s1089_s3 + $0x8] sm:$0xff]  ;;  %v408_v34 = vld [vmem:[%s1089_s3 + $0x10] sm:$0xff]  ;;  %v545_v56 = vsub.s32 0, %v544_v55  ;;  %s270_s25 = scalar_lea.vmem [#allocation3], %s269_s23  ;;  %s630_s15 = scalar_lea.sflag [#allocation4], %s269_s23 }
  0x1b   : > { %733 = vmatprep.subr.mxu0 %v275_v7  ;;  %v537_v15 = vld [vmem:[#allocation2] sm:$0x1]  ;;  %v409_v35 = vld [vmem:[%s1089_s3 + $0x18] sm:$0xff]  ;;  %s642_s30 = sshll.u32 %s270_s25, 4  ;;  %s836_s6 = scalar_lea.vmem %s835_s18, 32  ;;  %s643_s30 = int_to_ptr.vmem [resolvable:$true] %s642_s30 }
  0x1c   : > { %296 = vperm.xlu0 %808, %v282_v5   ;;  %734 = vmatpush3.msra.mxu0 %v275_v7  ;;  %v406_v16 = vld [vmem:[%s1089_s3] sm:$0xff]  ;;  %s830_s16 = scalar_lea.vmem %s643_s30, 16  ;;  %p837_p0 = scmp.lt.s32.totalorder %s643_s30, %s835_s18 }
  0x1d   : > { %286 = vperm.xlu1 %809, %v280_v6   ;;  %736 = vmatmul.mubr.msk.f32.vlgmr.msra.gmra.mxu0 %vm304_vm0, %v277_v8  ;;  %v536_v52 = vld [vmem:[%s1091_s5] sm:$0x1]  ;;  %p831_p11 = scmp.ne.s32.totalorder %s643_s30, %s830_s16  ;;  %p838_p1 = scmp.lt.s32.totalorder %s836_s6, %s830_s16 }
  0x1e   : > { %738 = vmatprep.mubr.msk.f32.mxu0 %vm304_vm0, %v278_v9  ;;  %749 = vmatprep.mubr.msk.f32.mxu1 %vm434_vm1, %v406_v16 }
  0x1f   : > { %755 = vmatprep.subr.mxu0 %v893_v36  ;;  %p832_p12 = pnand %p831_p11, %p977_p5  ;;  %p839_p2 = por %p838_p1, %p837_p0 }
  0x20   : > { %431 = vperm.xlu0 %808, %v413_v10  }
  0x21   : > { %426 = vperm.xlu1 %809, %v412_v11   ;;  %739 = vmatmul.mubr.msk.f32.gmra.mxu0 %vm304_vm0, %v279_v12  ;;  %p833_p13 = pneg %p832_p12 }
  0x22   : > { %763 = vmatprep.mubr.msk.f32.mxu0 %vm894_vm2, %v893_v36 }
  0x23   : > { %p840_p3 = pnand %p839_p2, %p833_p13 }
  0x24   : > { %421 = vperm.xlu0 %808, %v411_v13  }
  0x25   : > { %416 = vperm.xlu1 %809, %v410_v14  }
  0x28   : > { %540 = vperm.xlu0 %808, %v537_v15  }
  0x93   : > { %v302_v17 = vpop.permute.xlu0 %301 }
  0x94   : > { %v292_v19 = vpop.permute.xlu1 %291 }
  0x97   : > { %v297_v23 = vpop.permute.xlu0 %296 }
  0x98   : > { %v287_v27 = vpop.permute.xlu1 %286 }
  0x9b   : > { %v432_v37 = vpop.permute.xlu0 %431 }
  0x9c   : > { %v427_v39 = vpop.permute.xlu1 %426 }
  0x9f   : > { %v422_v43 = vpop.permute.xlu0 %421 }
  0xa0   : > { %v417_v47 = vpop.permute.xlu1 %416 }
  0xa3   : > { %v541_v57 = vpop.permute.xlu0 %540 }
  0xa4   : > { %v546_v58 = vrot.slane %v541_v57, %v545_v56 }
  0xdd   : > { %v737_v18 = vpop.f32.mrf.mxu0 }
  0xde   : > { %v389_v25 = vadd.f32 %v737_v18, %v292_v19 }
  0xdf   : > { %v383_v20 = vpop.f32.mrf.mxu0 }
  0xe0   : > { %v384_v28 = vadd.f32 %v383_v20, %v287_v27 }
  0xe1   : > { %v740_v21 = vpop.f32.mrf.mxu0 }
  0xe2   : > { %v399_v22 = vadd.f32 %v740_v21, %v302_v17 }
  0xe3   : > { %v393_v24 = vpop.f32.mrf.mxu0 }
  0xe4   : > { %810 = vtanh.f32 %v399_v22  ;;  %v394_v26 = vadd.f32 %v393_v24, %v297_v23 }
  0xe6   : > { %812 = vtanh.f32 %v394_v26 }
  0xe7   : > { %814 = vtanh.f32 %v389_v25 }
  0xe8   : > { %816 = vtanh.f32 %v384_v28 }
  0xf1   : > { %v811_v29 = vpop.eup %810 }
  0xf2   : > { %741 = vmatprep.subr.mxu1 %v811_v29 }
  0xf3   : > { %v813_v30 = vpop.eup %812  ;;  %742 = vmatpush3.msra.mxu1 %v811_v29 }
  0xf4   : > { %743 = vmatprep.subr.mxu1 %v813_v30  ;;  %v815_v31 = vpop.eup %814 }
  0xf5   : > { %744 = vmatpush3.msra.mxu1 %v813_v30  ;;  %v817_v32 = vpop.eup %816 }
  0xf6   : > { %745 = vmatprep.subr.mxu1 %v815_v31 }
  0xf7   : > { %746 = vmatpush3.msra.mxu1 %v815_v31 }
  0xf8   : > { %747 = vmatprep.subr.mxu1 %v817_v32 }
  0xf9   : > { %748 = vmatpush3.msra.mxu1 %v817_v32 }
  0xfa   : > { %750 = vmatmul.mubr.msk.f32.vlgmr.msra.gmra.mxu1 %vm434_vm1, %v407_v33 }
  0xfb   : > { %752 = vmatprep.mubr.msk.f32.mxu1 %vm434_vm1, %v408_v34 }
  0xfe   : > { %753 = vmatmul.mubr.msk.f32.gmra.mxu1 %vm434_vm1, %v409_v35 }
 0x1ba   : > { %v751_v38 = vpop.f32.mrf.mxu1 }
 0x1bb   : > { %v519_v45 = vadd.f32 %v751_v38, %v422_v43 }
 0x1bc   : > { %v513_v40 = vpop.f32.mrf.mxu1 }
 0x1bd   : > { %v514_v48 = vadd.f32 %v513_v40, %v417_v47 }
 0x1be   : > { %v754_v41 = vpop.f32.mrf.mxu1 }
 0x1bf   : > { %v529_v42 = vadd.f32 %v754_v41, %v432_v37 }
 0x1c0   : > { %v523_v44 = vpop.f32.mrf.mxu1 }
 0x1c1   : > { %818 = vtanh.f32 %v529_v42  ;;  %v524_v46 = vadd.f32 %v523_v44, %v427_v39 }
 0x1c3   : > { %820 = vtanh.f32 %v524_v46 }
 0x1c4   : > { %822 = vtanh.f32 %v519_v45 }
 0x1c5   : > { %824 = vtanh.f32 %v514_v48 }
 0x1ce   : > { %v819_v49 = vpop.eup %818 }
 0x1cf   : > { %756 = vmatpush3.msra.mxu0 %v819_v49 }
 0x1d0   : > { %v821_v50 = vpop.eup %820  ;;  %757 = vmatprep.subr.mxu0 %v893_v36 }
 0x1d1   : > { %758 = vmatpush3.msra.mxu0 %v821_v50  ;;  %v823_v51 = vpop.eup %822 }
 0x1d2   : > { %759 = vmatprep.subr.mxu0 %v893_v36  ;;  %v825_v53 = vpop.eup %824 }
 0x1d3   : > { %760 = vmatpush3.msra.mxu0 %v823_v51 }
 0x1d4   : > { %761 = vmatprep.subr.mxu0 %v893_v36 }
 0x1d5   : > { %762 = vmatpush3.msra.mxu0 %v825_v53 }
 0x1d6   : > { %764 = vmatmul.mubr.msk.f32.vlgmr.msra.gmra.mxu0 %vm434_vm1, %v536_v52 }
 0x296   : > { %v616_v59 = vpop.f32.mrf.mxu0 }
 0x297   : > { %v617_v60 = vadd.f32 %v616_v59, %v546_v58 }
 0x298   : > { %v765_v61 = vpop.f32.mrf.mxu0 }
 0x299   : > { %v711_v62 = vmul.f32 -1.442695, %v617_v60 }
 0x29b   : > { %826 = vpow2.f32 %v711_v62 }
 0x2a8   : > { %v827_v63 = vpop.eup %826 }
 0x2a9   : > { %v623_v0 = vadd.f32 1.0, %v827_v63 }
 0x2ab   : > { %828 = vrcp.f32 %v623_v0 }
 0x2b8   : > { %v829_v1 = vpop.eup %828 }
 0x2b9   : > { %v626_v2 = vmul.f32 0.9, %v829_v1 }
 0x2bb   : > { %v627_v3 = vadd.f32 0.1, %v626_v2 }
 0x2bd   : > { %628 = vst [vmem:[%s270_s25] sm:$0x1] %v627_v3 }
 0x2be   : > { %843 = shalt.err (!%p840_p3)
}
 0x2bf   : > { %s844_s19 = scalar_lea.hbm %s640_s14, 16  ;;  %s848_s22 = scalar_lea.hbm %s1093_s7, 32 }
 0x2c0   : > { %p845_p4 = scmp.ne.s32.totalorder %s640_s14, %s844_s19  ;;  %p849_p9 = scmp.lt.s32.totalorder %s640_s14, %s1093_s7 }
 0x2c1   : > { %p850_p10 = scmp.lt.s32.totalorder %s848_s22, %s844_s19 }
 0x2c2   : > { %p846_p7 = pnand %p845_p4, %p977_p5 }
 0x2c3   : > { %p851_p11 = por %p850_p10, %p849_p9 }
 0x2c4   : > { %p847_p8 = pneg %p846_p7 }
 0x2c6   : > { %p852_p12 = pnand %p851_p11, %p847_p8 }
 0x2c8   : > { %855 = shalt.err (!%p852_p12)
}
 0x2c9   : > { %766 = dma.vmem_to_hbm [thread:$0]  (%p977_p5), %s643_s30, 16, %s640_s14, %s630_s15  }
 0x2ca PF: > { %p772_p13 = scmp.ge.s32.totalorder %s890_s29, 2  ;;  %s654_s25 = sand.u32 1, %s878_s26  }
 0x2cb   : > { %s655_s9 = scalar_lea.sflag [#allocation4], %s654_s25 }
 0x2cc   : > { %p769_p0 = pnand %p772_p13, %p981_p6 }
 0x2ce   : > { %p770_p1 = pneg %p769_p0 }
 0x2d0   : > { %873 = dma.done.wait (%p770_p1), %s655_s9, 16  }
 0x2d1   : > { %875 = vsyncadd (%p770_p1), %s655_s9, 4294967280  ;;  %p19_p2 = scmp.ge.s32.totalorder %s964_s8, 4   ;;  %s1096_s26 = smov %s882_s27 }
 0x2d2   : > { %s1097_s27 = smov %s886_s28  ;;  %s1098_s28 = smov %s975_s11 }
 0x2d3   : > { %s1099_s29 = smov %s964_s8  ;;  %21 = sbr.rel (!%p19_p2) target bundleno = 6 (0x6), region = 83 }
 0x2d8   :  { %659 = vsyncpa [#allocation4], 1 }
 0x2d9   :  { %661 = vsyncpa [#allocation4 + $0x1], 1 }

</bundles_post_ra>
